<compile_context>
chip_gen: v6e
topology: v6e:2x2x1
jax: 0.10.0
libtpu: 0.0.40
codegen_flags: <defaults>
</compile_context>

<pallas_src>
import functools

import numpy as np
import jax
import jax.numpy as jnp
from jax import lax
from jax.experimental import pallas as pl
from jax.experimental.pallas import tpu as pltpu


# ----------------------------------------------------------------------------
# helpers
# ----------------------------------------------------------------------------

def _choose_tile(total, cap):
    """Largest multiple-of-8 divisor of `total` not exceeding `cap` (fallback: total)."""
    best = None
    upper = min(total, cap)
    for t in range(8, upper + 1, 8):
        if total % t == 0:
            best = t
    return best if best is not None else total


def _choose_row_tile(H, W, Q, K, budget_bytes=6 << 20):
    """Pick an H tile for the fused semantic kernel that keeps VMEM bounded."""
    per_row = (2 * K + 2 * Q) * W * 4          # out tile + up/sig intermediates (~2x buffered)
    cap = max(8, budget_bytes // max(per_row, 1))
    best = H                                   # full-height block is always legal
    for t in range(8, H + 1, 8):
        if H % t == 0 and t <= cap and (t * W) % 128 == 0:
            best = t
    return best


def _bilinear_matrix(out_size, in_size):
    """Row-interpolation matrix matching F.interpolate(mode='bilinear', align_corners=False)."""
    scale = in_size / out_size
    i = np.arange(out_size)
    src = np.maximum((i + 0.5) * scale - 0.5, 0.0)
    x0 = np.minimum(np.floor(src).astype(np.int64), in_size - 1)
    x1 = np.minimum(x0 + 1, in_size - 1)
    w1 = (src - x0).astype(np.float32)
    w0 = (1.0 - w1).astype(np.float32)
    A = np.zeros((out_size, in_size), np.float32)
    A[np.arange(out_size), x0] += w0
    A[np.arange(out_size), x1] += w1
    return jnp.asarray(A)


# ----------------------------------------------------------------------------
# Pallas kernels
# ----------------------------------------------------------------------------

def _mm_kernel(x_ref, w_ref, b_ref, o_ref, *, activation):
    """(TM, K) @ (K, N) + bias (+ReLU), bf16 MXU inputs, f32 accumulation."""
    y = jnp.dot(x_ref[...], w_ref[...], preferred_element_type=jnp.float32) + b_ref[...]
    if activation == "relu":
        y = jnp.maximum(y, 0.0)
    o_ref[...] = y.astype(o_ref.dtype)


def matmul_2d(x, w, bias=None, activation="none", out_dtype=jnp.float32, tile_m=256):
    """Shared-weight matmul with batch folded into M and the M axis tiled."""
    M, K = x.shape
    _, N = w.shape
    if bias is None:
        bias = jnp.zeros((N,), jnp.float32)
    bias = bias.reshape(1, N).astype(jnp.float32)
    tm = _choose_tile(M, tile_m)
    kernel = functools.partial(_mm_kernel, activation=activation)
    return pl.pallas_call(
        kernel,
        out_shape=jax.ShapeDtypeStruct((M, N), out_dtype),
        grid=(M // tm,),
        in_specs=[
            pl.BlockSpec((tm, K), lambda i: (i, 0)),
            pl.BlockSpec((K, N), lambda i: (0, 0)),
            pl.BlockSpec((1, N), lambda i: (0, 0)),
        ],
        out_specs=pl.BlockSpec((tm, N), lambda i: (i, 0)),
        compiler_params=pltpu.CompilerParams(dimension_semantics=("parallel",)),
    )(x.astype(jnp.bfloat16), w.astype(jnp.bfloat16), bias)


def _head_kernel(feat_ref, qe_ref, wcls_ref, bcls_ref, wm1_ref, bm1_ref,
                 wm2_ref, bm2_ref, wpix_ref, bpix_ref,
                 dec_ref, logits_ref, membed_ref, pmask_ref, *, scale):
    """Fused Mask2Former head for one image: cross-attention + class head + mask-embed
    MLP + pixel projection + mask prediction, all on VMEM-resident activations."""
    feat = feat_ref[0]                                         # (N, D) bf16
    q = qe_ref[...]                                            # (Q, D) bf16

    # single-head cross attention of the learned queries over the flattened feature map
    s = lax.dot_general(q, feat, (((1,), (1,)), ((), ())),
                        preferred_element_type=jnp.float32) * scale          # (Q, N)
    mx = jnp.max(s, axis=-1, keepdims=True)
    p = jnp.exp(s - mx)
    p = p / jnp.sum(p, axis=-1, keepdims=True)
    dec = jnp.dot(p.astype(jnp.bfloat16), feat,
                  preferred_element_type=jnp.float32)                        # (Q, D) f32
    dec_ref[0] = dec

    dec_b = dec.astype(jnp.bfloat16)
    logits_ref[0] = (jnp.dot(dec_b, wcls_ref[...],
                             preferred_element_type=jnp.float32) + bcls_ref[...])
    hid = jnp.maximum(
        jnp.dot(dec_b, wm1_ref[...], preferred_element_type=jnp.float32) + bm1_ref[...],
        0.0)
    membed = (jnp.dot(hid.astype(jnp.bfloat16), wm2_ref[...],
                      preferred_element_type=jnp.float32) + bm2_ref[...])    # (Q, D)
    membed_ref[0] = membed

    # pixel embedding stays resident in VMEM -- never written to HBM
    mfeat = (jnp.dot(feat, wpix_ref[...],
                     preferred_element_type=jnp.float32) + bpix_ref[...])    # (N, D)
    # pred_masks = mask_embed . mask_features^T, contracted directly on D
    pmask_ref[0] = lax.dot_general(
        membed.astype(jnp.bfloat16), mfeat.astype(jnp.bfloat16),
        (((1,), (1,)), ((), ())), preferred_element_type=jnp.float32)        # (Q, N)


def mask2former_head(feat, query_embed, params):
    """feat: (B, N, D) bf16/f32; returns decoder_output, pred_logits, mask_embed, pred_masks."""
    B, N, D = feat.shape
    Q = query_embed.shape[0]
    Kp1 = params["w_cls"].shape[1]
    bf = jnp.bfloat16
    kernel = functools.partial(_head_kernel, scale=1.0 / float(np.sqrt(D)))
    full2 = lambda i: (0, 0)
    out_shapes = (
        jax.ShapeDtypeStruct((B, Q, D), jnp.float32),      # decoder_output
        jax.ShapeDtypeStruct((B, Q, Kp1), jnp.float32),    # pred_logits
        jax.ShapeDtypeStruct((B, Q, D), jnp.float32),      # mask_embed
        jax.ShapeDtypeStruct((B, Q, N), jnp.float32),      # pred_masks (flattened spatial)
    )
    dec, logits, membed, pmask = pl.pallas_call(
        kernel,
        out_shape=out_shapes,
        grid=(B,),
        in_specs=[
            pl.BlockSpec((1, N, D), lambda i: (i, 0, 0)),  # feat (per image)
            pl.BlockSpec((Q, D), full2),                   # query_embed (shared)
            pl.BlockSpec((D, Kp1), full2), pl.BlockSpec((1, Kp1), full2),
            pl.BlockSpec((D, D), full2), pl.BlockSpec((1, D), full2),
            pl.BlockSpec((D, D), full2), pl.BlockSpec((1, D), full2),
            pl.BlockSpec((D, D), full2), pl.BlockSpec((1, D), full2),
        ],
        out_specs=(
            pl.BlockSpec((1, Q, D), lambda i: (i, 0, 0)),
            pl.BlockSpec((1, Q, Kp1), lambda i: (i, 0, 0)),
            pl.BlockSpec((1, Q, D), lambda i: (i, 0, 0)),
            pl.BlockSpec((1, Q, N), lambda i: (i, 0, 0)),
        ),
        compiler_params=pltpu.CompilerParams(dimension_semantics=("parallel",)),
    )(feat.astype(bf), query_embed.astype(bf),
      params["w_cls"].astype(bf), params["b_cls"].reshape(1, -1).astype(jnp.float32),
      params["w_m1"].astype(bf), params["b_m1"].reshape(1, -1).astype(jnp.float32),
      params["w_m2"].astype(bf), params["b_m2"].reshape(1, -1).astype(jnp.float32),
      params["w_pix"].astype(bf), params["b_pix"].reshape(1, -1).astype(jnp.float32))
    return dec, logits, membed, pmask


def _semantic_kernel(cls_ref, mask_ref, ah_ref, awt_ref, o_ref, *, num_classes):
    """Fused: bilinear upsample (this H tile) + sigmoid + softmax-prob combine.
    Produces a lane-dense (K, TILE_H*W) slab; the full-res per-query masks never hit HBM."""
    Q, h, w = mask_ref.shape[1], mask_ref.shape[2], mask_ref.shape[3]
    TH = ah_ref.shape[0]
    W = awt_ref.shape[1]

    # softmax over classes, drop the trailing "no-object" logit -> (Q, K)
    logits = cls_ref[0]
    mx = jnp.max(logits, axis=-1, keepdims=True)
    e = jnp.exp(logits - mx)
    probs = (e / jnp.sum(e, axis=-1, keepdims=True))[:, :num_classes]

    masks = mask_ref[0]                                                    # (Q, h, w)
    # width upsample: (Q*h, w) @ (w, W)
    t = jnp.dot(masks.reshape(Q * h, w), awt_ref[...],
                preferred_element_type=jnp.float32).reshape(Q, h, W)
    # height upsample for this H tile, as a batched matmul over queries
    ah_b = jnp.broadcast_to(ah_ref[...][None], (Q, TH, h))
    up = jnp.einsum('qth,qhw->qtw', ah_b, t,
                    preferred_element_type=jnp.float32)                    # (Q, TH, W)
    sig = 1.0 / (1.0 + jnp.exp(-up))
    # combine over queries on the MXU: (K, Q) @ (Q, TH*W)
    o_ref[0] = jnp.dot(probs.T, sig.reshape(Q, TH * W),
                       preferred_element_type=jnp.float32)                 # (K, TH*W)


def semantic_inference_fused(mask_cls, mask_pred_low, A_h, A_w, num_classes):
    """mask_cls: (B, Q, K+1); mask_pred_low: (B, Q, h, w); A_h: (H, h); A_w: (W, w)
    -> sem_seg (B, K, H, W).  Equivalent to F.interpolate + semantic_inference."""
    B, Q, Kp1 = mask_cls.shape
    _, _, h, w = mask_pred_low.shape
    H = A_h.shape[0]
    W = A_w.shape[0]
    K = num_classes
    TH = _choose_row_tile(H, W, Q, K)
    kernel = functools.partial(_semantic_kernel, num_classes=K)
    out = pl.pallas_call(
        kernel,
        out_shape=jax.ShapeDtypeStruct((B, K, H * W), jnp.float32),
        grid=(B, H // TH),
        in_specs=[
            pl.BlockSpec((1, Q, Kp1), lambda b, t: (b, 0, 0)),
            pl.BlockSpec((1, Q, h, w), lambda b, t: (b, 0, 0, 0)),
            pl.BlockSpec((TH, h), lambda b, t: (t, 0)),
            pl.BlockSpec((w, W), lambda b, t: (0, 0)),
        ],
        out_specs=pl.BlockSpec((1, K, TH * W), lambda b, t: (b, 0, t)),
        compiler_params=pltpu.CompilerParams(
            dimension_semantics=("parallel", "parallel")),
    )(mask_cls.astype(jnp.float32), mask_pred_low.astype(jnp.float32),
      A_h.astype(jnp.float32), jnp.transpose(A_w).astype(jnp.float32))
    return out.reshape(B, K, H, W)


# ----------------------------------------------------------------------------
# MaskFormer (synthetic backbone + head parameters, deterministic init)
# ----------------------------------------------------------------------------

class MaskFormer:
    def __init__(self, *, in_channels=3, patch=4, hidden_dim=32, num_queries=8,
                 num_classes=16, semantic_on=True, panoptic_on=False, instance_on=False,
                 sem_seg_postprocess_before_inference=False,
                 object_mask_threshold=0.8, overlap_threshold=0.8, test_topk_per_image=8,
                 pixel_mean=(123.675, 116.28, 103.53), pixel_std=(58.395, 57.12, 57.375)):
        self.patch = patch
        self.hidden_dim = hidden_dim
        self.num_queries = num_queries
        self.num_classes = num_classes
        self.semantic_on = semantic_on
        self.panoptic_on = panoptic_on
        self.instance_on = instance_on
        self.sem_seg_postprocess_before_inference = sem_seg_postprocess_before_inference
        self.object_mask_threshold = object_mask_threshold
        self.overlap_threshold = overlap_threshold
        self.test_topk_per_image = test_topk_per_image
        if not self.semantic_on:
            assert self.sem_seg_postprocess_before_inference
        # registered buffers (not applied: this forward variant feeds batched_inputs
        # straight to the backbone, matching the provided spec)
        self.pixel_mean = jnp.asarray(pixel_mean, jnp.float32).reshape(-1, 1, 1)
        self.pixel_std = jnp.asarray(pixel_std, jnp.float32).reshape(-1, 1, 1)

        D, Q, K = hidden_dim, num_queries, num_classes
        stem_in = patch * patch * in_channels
        key = jax.random.PRNGKey(0)
        ks = jax.random.split(key, 10)
        s = 0.05
        self.params = {
            "w_stem": jax.random.normal(ks[0], (stem_in, D), jnp.float32) * s,
            "b_stem": jnp.zeros((D,), jnp.float32),
            "query_embed": jax.random.normal(ks[1], (Q, D), jnp.float32) * s,
            "w_cls": jax.random.normal(ks[2], (D, K + 1), jnp.float32) * s,
            "b_cls": jnp.zeros((K + 1,), jnp.float32),
            "w_m1": jax.random.normal(ks[3], (D, D), jnp.float32) * s,
            "b_m1": jnp.zeros((D,), jnp.float32),
            "w_m2": jax.random.normal(ks[4], (D, D), jnp.float32) * s,
            "b_m2": jnp.zeros((D,), jnp.float32),
            "w_pix": jax.random.normal(ks[5], (D, D), jnp.float32) * s,
            "b_pix": jnp.zeros((D,), jnp.float32),
        }

    # --- synthetic backbone: stride-`patch` conv stem (im2col + Pallas matmul) + ReLU ---
    def backbone(self, images_nchw):
        p = self.params
        B, C, H, W = images_nchw.shape
        P = self.patch
        assert H % P == 0 and W % P == 0, "input spatial dims must be divisible by patch"
        x = jnp.transpose(images_nchw, (0, 2, 3, 1))                      # NHWC
        x = x.reshape(B, H // P, P, W // P, P, C)
        x = jnp.transpose(x, (0, 1, 3, 2, 4, 5)).reshape(
            B * (H // P) * (W // P), P * P * C)                            # batch folded into M
        feat = matmul_2d(x, p["w_stem"], p["b_stem"], activation="relu",
                         out_dtype=jnp.bfloat16)                           # (B*N, D) bf16
        N = (H // P) * (W // P)
        return {"feat_flat": feat.reshape(B, N, self.hidden_dim),
                "hw": (H // P, W // P)}

    # --- synthetic Mask2Former head: one fused Pallas kernel per image ---
    def sem_seg_head(self, features):
        p = self.params
        feat = features["feat_flat"]                                       # (B, N, D)
        h, w = features["hw"]
        B, _, _ = feat.shape
        Q = self.num_queries
        dec, logits, membed, pmask = mask2former_head(feat, p["query_embed"], p)
        return {
            "pred_logits": logits,                                         # (B, Q, K+1)
            "pred_masks": pmask.reshape(B, Q, h, w),                       # low-res masks
            "decoder_output": dec,                                         # (B, Q, D)
            "mask_embed": membed,                                          # (B, Q, D)
        }

    # --- forward pass mirroring the PyTorch module (inference path) ---
    def forward(self, batched_inputs, device, input_shape):
        B, C, Hi, Wi = batched_inputs.shape
        features = self.backbone(batched_inputs)
        outputs = self.sem_seg_head(features)
        mask_cls_results = outputs["pred_logits"]
        mask_pred_low = outputs["pred_masks"]
        decoder_outputs = outputs["decoder_output"]
        mask_embed = outputs["mask_embed"]
        h, w = features["hw"]
        del outputs

        # F.interpolate(mode='bilinear', align_corners=False) to the input resolution is a
        # separable linear map -> row/col matrices.  The optional sem_seg_postprocess
        # (crop + second resize) is also linear, so it is folded in by composing matrices.
        # The full-resolution (B, Q, H, W) mask tensor is therefore never written to HBM.
        A_h = _bilinear_matrix(Hi, h)
        A_w = _bilinear_matrix(Wi, w)
        if self.sem_seg_postprocess_before_inference:
            img_h, img_w = Hi, Wi                  # crop window == padded input size here
            A_h = jnp.dot(_bilinear_matrix(int(input_shape[0]), img_h), A_h[:img_h])
            A_w = jnp.dot(_bilinear_matrix(int(input_shape[1]), img_w), A_w[:img_w])

        processed_results_dict = {
            "decoder_outputs": decoder_outputs,
            "sem_seg": None,
            "panoptic_seg": None,
            "instances": None,
            "instances_scores": None,
            "mask_embed": mask_embed,
        }

        if self.semantic_on:
            processed_results_dict["sem_seg"] = semantic_inference_fused(
                mask_cls_results, mask_pred_low, A_h, A_w, self.num_classes)

        # TODO(synk): panoptic_inference / instance_inference need data-dependent boolean
        #             indexing, topk + gather and Python loops over variable-length
        #             segments; no clean static-shape Pallas form (flags default to False).
        return processed_results_dict


# ----------------------------------------------------------------------------
if __name__ == "__main__":
    B, C, H, W = 2, 3, 64, 128
    key = jax.random.PRNGKey(0)
    images = jax.random.normal(key, (B, C, H, W), jnp.float32)            # NCHW, like PyTorch

    model = MaskFormer()
    out = model.forward(images, device="tpu", input_shape=(H, W))

    sem_seg = jax.block_until_ready(out["sem_seg"])
    dec = jax.block_until_ready(out["decoder_outputs"])
    emb = jax.block_until_ready(out["mask_embed"])

    assert sem_seg.shape == (B, model.num_classes, H, W)
    assert dec.shape == (B, model.num_queries, model.hidden_dim)
    assert emb.shape == (B, model.num_queries, model.hidden_dim)
    assert bool(jnp.all(jnp.isfinite(sem_seg)))
    print("KERNEL_OK")
</pallas_src>

<mosaic_0001>
module attributes {stable_mosaic.version = 11 : i64} {
  func.func @_mm_kernel(%arg0: i32, %arg1: memref<256x48xbf16, #tpu.memory_space<vmem>>, %arg2: memref<48x32xbf16, #tpu.memory_space<vmem>>, %arg3: memref<1x32xf32, #tpu.memory_space<vmem>>, %arg4: memref<256x32xbf16, #tpu.memory_space<vmem>>) attributes {dimension_semantics = [#tpu.dimension_semantics<parallel>], iteration_bounds = array<i64: 4>, scalar_prefetch = 0 : i64, scratch_operands = 0 : i64, tpu.core_type = #tpu.core_type<tc>, window_params = [{transform_indices = @transform_0, window_bounds = array<i64: 256, 48>}, {pipeline_mode = #tpu.pipeline_mode<synchronous>, transform_indices = @transform_1, window_bounds = array<i64: 48, 32>}, {pipeline_mode = #tpu.pipeline_mode<synchronous>, transform_indices = @transform_2, window_bounds = array<i64: 1, 32>}, {transform_indices = @transform_3, window_bounds = array<i64: 256, 32>}]} {
    %c0 = arith.constant 0 : index
    %c0_0 = arith.constant 0 : index
    %0 = vector.load %arg1[%c0, %c0_0] : memref<256x48xbf16, #tpu.memory_space<vmem>>, vector<256x48xbf16>
    %c0_1 = arith.constant 0 : index
    %c0_2 = arith.constant 0 : index
    %1 = vector.load %arg2[%c0_1, %c0_2] : memref<48x32xbf16, #tpu.memory_space<vmem>>, vector<48x32xbf16>
    %cst = arith.constant dense<0.000000e+00> : vector<256x32xf32>
    %2 = tpu.matmul %0, %1, %cst {dimension_numbers = #tpu.dot_dimension_numbers<[1], [0], [0], [1], [0, 0, 1, 1], [], []>} : vector<256x48xbf16>, vector<48x32xbf16>, vector<256x32xf32> -> vector<256x32xf32>
    %c0_3 = arith.constant 0 : index
    %c0_4 = arith.constant 0 : index
    %3 = vector.load %arg3[%c0_3, %c0_4] : memref<1x32xf32, #tpu.memory_space<vmem>>, vector<1x32xf32>
    %4 = vector.broadcast %3 : vector<1x32xf32> to vector<256x32xf32>
    %5 = arith.addf %2, %4 : vector<256x32xf32>
    %cst_5 = arith.constant 0.000000e+00 : f32
    %6 = vector.broadcast %cst_5 : f32 to vector<256x32xf32>
    %7 = arith.maximumf %5, %6 : vector<256x32xf32>
    %8 = arith.truncf %7 : vector<256x32xf32> to vector<256x32xbf16>
    %c0_6 = arith.constant 0 : index
    %c0_7 = arith.constant 0 : index
    %9 = vector.load %arg4[%c0_6, %c0_7] : memref<256x32xbf16, #tpu.memory_space<vmem>>, vector<256x32xbf16>
    tpu.vector_store %arg4[%c0_6, %c0_7], %8 {strides = array<i32>} : memref<256x32xbf16, #tpu.memory_space<vmem>>, vector<256x32xbf16>,
    return
  }
  func.func @transform_0(%arg0: i32) -> (i32, i32) {
    %c0_i32 = arith.constant 0 : i32
    %c0_i32_0 = arith.constant 0 : i32
    return %arg0, %c0_i32 : i32, i32
  }
  func.func @transform_1(%arg0: i32) -> (i32, i32) {
    %c0_i32 = arith.constant 0 : i32
    %c0_i32_0 = arith.constant 0 : i32
    %c0_i32_1 = arith.constant 0 : i32
    return %c0_i32, %c0_i32_0 : i32, i32
  }
  func.func @transform_2(%arg0: i32) -> (i32, i32) {
    %c0_i32 = arith.constant 0 : i32
    %c0_i32_0 = arith.constant 0 : i32
    %c0_i32_1 = arith.constant 0 : i32
    return %c0_i32, %c0_i32_0 : i32, i32
  }
  func.func @transform_3(%arg0: i32) -> (i32, i32) {
    %c0_i32 = arith.constant 0 : i32
    %c0_i32_0 = arith.constant 0 : i32
    return %arg0, %c0_i32 : i32, i32
  }
}

</mosaic_0001>

<bundles_post_ra>
// kernel: tpu_custom_call.1
= control target key start
LH: loop header
LB: loop body
LE: loop exit
PB: predicated region body
PF: predicated region fallthrough
CT: control target
= control target key end

     0   :  { %s1006_s12 = smov 0   ;;  %s1176_s0 = inlined_call_operand.vmem [shape: bf16[1024,48], index: 0, kind: input, shape index: {}]   ;;  %s1177_s1 = inlined_call_operand.vmem [shape: bf16[48,32], index: 1, kind: input, shape index: {}]   ;;  %s1178_s2 = inlined_call_operand.vmem [shape: f32[1,32], index: 2, kind: input, shape index: {}]   ;;  %s1179_s3 = inlined_call_operand.vmem [shape: bf16[1024,32], index: 3, kind: output, shape index: {}]  }
   0x1 LB: > { %s777_s13 = sadd.s32 4294967295, %s984_s12   ;;  %p781_p0 = scmp.ge.s32.totalorder %s984_s12, 1  ;;  %s984_s12 = sphi %s1006_s12, %s13_s12  }
   0x2   : > { %p138_p1 = scmp.lt.s32.totalorder %s984_s12, 5 }
   0x4   : > { %p139_p2 = pnand %p781_p0, %p138_p1 }
   0x5   : > { %s782_s16 = sshll.u32 (!%p139_p2), %s777_s13, 5 }
   0x6   : > { %142 = sbr.rel (%p139_p2) target bundleno = 255 (0xff), region = 32  ;;  %p163_p3 = scmp.lt.s32.totalorder (!%p139_p2), %s782_s16, 127 }
   0xb   : > { %v959_v0 = vld [vmem:[%s1177_s1 + $0x10] sm:$0xff]   ;;  %v960_v1 = vld [vmem:[%s1177_s1 + $0x8] sm:$0xff]   ;;  %s1181_s16 = smov (!%p163_p3, %s782_s16), 127  ;;  %v961_v2 = vld [vmem:[%s1177_s1] sm:$0xff]   ;;  %vm318_vm0 = vcmask 392192   ;;  %vm688_vm1 = vcmask 257024  }
   0xc   : > { %907 = vmatprep.subr.bf16.mxu0 %v959_v0  ;;  %945 = vmatprep.subr.bf16.mxu1 %v959_v0  ;;  %s783_s21 = sshll.u32 %s1181_s16, 2  ;;  %v1068_v19 = vld [vmem:[%s1178_s2] ss:$0 sm:$0xff] }
   0xd   : > { %908 = vmatpush3.bf16.msra.mxu0 %v959_v0  ;;  %948 = vmatpush3.bf16.msra.mxu1 %v959_v0  ;;  %s1031_s24 = scalar_lea.vmem %s1176_s0, %s783_s21  ;;  %s1079_s29 = scalar_lea.vmem %s1179_s3, %s783_s21 }
   0xe   : > { %909 = vmatprep.subr.bf16.mxu0 %v960_v1  ;;  %946 = vmatprep.subr.bf16.mxu1 %v960_v1  ;;  %v962_v3 = vld [vmem:[%s1031_s24] sm:$0xff]   ;;  %v964_v5 = vld [vmem:[%s1031_s24 + $0x8] sm:$0xff]   ;;  %v966_v7 = vld [vmem:[%s1031_s24 + $0x10] sm:$0xff]  }
   0xf   : > { %v963_v4 = vld [vmem:[%s1031_s24 + $0x40] sm:$0xff]   ;;  %913 = vmatprep.mubr.msk.bf16.mxu0 %vm318_vm0, %v962_v3  ;;  %v965_v6 = vld [vmem:[%s1031_s24 + $0x48] sm:$0xff]   ;;  %v967_v8 = vld [vmem:[%s1031_s24 + $0x50] sm:$0xff]  }
  0x10   : > { %929 = vmatprep.mubr.msk.bf16.mxu1 %vm318_vm0, %v963_v4  ;;  %v968_v9 = vld [vmem:[%s1031_s24 + $0x18] sm:$0xff]   ;;  %v970_v11 = vld [vmem:[%s1031_s24 + $0x20] sm:$0xff]   ;;  %v972_v13 = vld [vmem:[%s1031_s24 + $0x28] sm:$0xff]  }
  0x11   : > { %910 = vmatpush3.bf16.msra.mxu0 %v960_v1  ;;  %949 = vmatpush3.bf16.msra.mxu1 %v960_v1  ;;  %v969_v10 = vld [vmem:[%s1031_s24 + $0x58] sm:$0xff]   ;;  %v971_v12 = vld [vmem:[%s1031_s24 + $0x60] sm:$0xff]   ;;  %v973_v14 = vld [vmem:[%s1031_s24 + $0x68] sm:$0xff]  }
  0x12   : > { %911 = vmatprep.subr.bf16.mxu0 %v961_v2  ;;  %947 = vmatprep.subr.bf16.mxu1 %v961_v2  ;;  %v974_v15 = vld [vmem:[%s1031_s24 + $0x30] sm:$0xff]   ;;  %v976_v17 = vld [vmem:[%s1031_s24 + $0x38] sm:$0xff]  }
  0x13   : > { %v975_v16 = vld [vmem:[%s1031_s24 + $0x70] sm:$0xff]   ;;  %v977_v18 = vld [vmem:[%s1031_s24 + $0x78] sm:$0xff]  }
  0x15   : > { %912 = vmatpush3.bf16.msra.mxu0 %v961_v2  ;;  %950 = vmatpush3.bf16.msra.mxu1 %v961_v2 }
  0x18   : > { %914 = vmatmul.mubr.msk.bf16.vlgmr.msra.gmra.mxu0 %vm318_vm0, %v964_v5  ;;  %930 = vmatmul.mubr.msk.bf16.vlgmr.msra.gmra.mxu1 %vm318_vm0, %v965_v6 }
  0x19   : > { %917 = vmatprep.mubr.msk.bf16.mxu0 %vm318_vm0, %v966_v7  ;;  %933 = vmatprep.mubr.msk.bf16.mxu1 %vm318_vm0, %v967_v8 }
  0x20   : > { %918 = vmatmul.mubr.msk.bf16.gmra.mxu0 %vm318_vm0, %v968_v9  ;;  %934 = vmatmul.mubr.msk.bf16.gmra.mxu1 %vm318_vm0, %v969_v10 }
  0x21   : > { %921 = vmatprep.mubr.msk.bf16.mxu0 %vm318_vm0, %v970_v11  ;;  %937 = vmatprep.mubr.msk.bf16.mxu1 %vm318_vm0, %v971_v12 }
  0x28   : > { %922 = vmatmul.mubr.msk.bf16.gmra.mxu0 %vm318_vm0, %v972_v13  ;;  %938 = vmatmul.mubr.msk.bf16.gmra.mxu1 %vm318_vm0, %v973_v14 }
  0x29   : > { %925 = vmatprep.mubr.msk.bf16.mxu0 %vm318_vm0, %v974_v15  ;;  %941 = vmatprep.mubr.msk.bf16.mxu1 %vm318_vm0, %v975_v16 }
  0x30   : > { %926 = vmatmul.mubr.msk.bf16.gmra.mxu0 %vm318_vm0, %v976_v17  ;;  %942 = vmatmul.mubr.msk.bf16.gmra.mxu1 %vm318_vm0, %v977_v18 }
  0xd8   : > { %v915_v20 = vpop.f32.mrf.mxu0  ;;  %v931_v21 = vpop.f32.mrf.mxu1 }
  0xd9   : > { %v410_v22 = vadd.f32 %v915_v20, %v1068_v19  ;;  %v474_v23 = vadd.f32 %v931_v21, %v1068_v19 }
  0xda   : > { %v401_v24 = vpop.f32.mrf.mxu0  ;;  %v465_v25 = vpop.f32.mrf.mxu1 }
  0xdb   : > { %v530_v26 = vmax.f32 %v410_v22, 0.0  ;;  %v546_v27 = vmax.f32 %v474_v23, 0.0  ;;  %v402_v28 = vadd.f32 %v1068_v19, %v401_v24  ;;  %v466_v29 = vadd.f32 %v1068_v19, %v465_v25 }
  0xdc   : > { %v916_v30 = vpop.f32.mrf.mxu0  ;;  %v932_v31 = vpop.f32.mrf.mxu1 }
  0xdd   : > { %v858_v32 = vpack.c.bf16 %v530_v26, %v530_v26  ;;  %v874_v33 = vpack.c.bf16 %v546_v27, %v546_v27  ;;  %v528_v34 = vmax.f32 %v402_v28, 0.0  ;;  %v544_v35 = vmax.f32 %v466_v29, 0.0 }
  0xde   : > { %v413_v36 = vadd.f32 %v916_v30, %v1068_v19  ;;  %v477_v37 = vadd.f32 %v932_v31, %v1068_v19  ;;  %v404_v38 = vpop.f32.mrf.mxu0  ;;  %v468_v39 = vpop.f32.mrf.mxu1 }
  0xdf   : > { %691 = vst.msk [vmem:[%s1079_s29 + $0x8] sm:$0xf] %vm688_vm1, %v858_v32  ;;  %707 = vst.msk [vmem:[%s1079_s29 + $0x48] sm:$0xf] %vm688_vm1, %v874_v33  ;;  %v856_v40 = vpack.c.bf16 %v528_v34, %v528_v34  ;;  %v872_v41 = vpack.c.bf16 %v544_v35, %v544_v35  ;;  %v405_v42 = vadd.f32 %v1068_v19, %v404_v38 }
  0xe0   : > { %v469_v43 = vadd.f32 %v1068_v19, %v468_v39  ;;  %v531_v44 = vmax.f32 %v413_v36, 0.0  ;;  %v547_v45 = vmax.f32 %v477_v37, 0.0  ;;  %v919_v46 = vpop.f32.mrf.mxu0  ;;  %v935_v47 = vpop.f32.mrf.mxu1 }
  0xe1   : > { %689 = vst.msk [vmem:[%s1079_s29] sm:$0xf] %vm688_vm1, %v856_v40  ;;  %705 = vst.msk [vmem:[%s1079_s29 + $0x40] sm:$0xf] %vm688_vm1, %v872_v41  ;;  %v529_v48 = vmax.f32 %v405_v42, 0.0  ;;  %v426_v50 = vadd.f32 %v919_v46, %v1068_v19  ;;  %v490_v51 = vadd.f32 %v935_v47, %v1068_v19 }
  0xe2   : > { %v545_v49 = vmax.f32 %v469_v43, 0.0  ;;  %v859_v52 = vpack.c.bf16 %v531_v44, %v531_v44  ;;  %v875_v53 = vpack.c.bf16 %v547_v45, %v547_v45  ;;  %v417_v54 = vpop.f32.mrf.mxu0  ;;  %v481_v55 = vpop.f32.mrf.mxu1 }
  0xe3   : > { %v857_v56 = vpack.c.bf16 %v529_v48, %v529_v48  ;;  %v534_v58 = vmax.f32 %v426_v50, 0.0  ;;  %v550_v59 = vmax.f32 %v490_v51, 0.0  ;;  %v418_v60 = vadd.f32 %v1068_v19, %v417_v54 }
  0xe4   : > { %v873_v57 = vpack.c.bf16 %v545_v49, %v545_v49  ;;  %692 = vst.msk [vmem:[%s1079_s29 + $0xc] sm:$0xf] %vm688_vm1, %v859_v52  ;;  %708 = vst.msk [vmem:[%s1079_s29 + $0x4c] sm:$0xf] %vm688_vm1, %v875_v53  ;;  %v482_v61 = vadd.f32 %v1068_v19, %v481_v55  ;;  %v920_v62 = vpop.f32.mrf.mxu0  ;;  %v936_v63 = vpop.f32.mrf.mxu1 }
  0xe5   : > { %690 = vst.msk [vmem:[%s1079_s29 + $0x4] sm:$0xf] %vm688_vm1, %v857_v56  ;;  %v862_v0 = vpack.c.bf16 %v534_v58, %v534_v58  ;;  %v878_v1 = vpack.c.bf16 %v550_v59, %v550_v59  ;;  %v429_v2 = vadd.f32 %v920_v62, %v1068_v19  ;;  %v493_v3 = vadd.f32 %v936_v63, %v1068_v19 }
  0xe6   : > { %706 = vst.msk [vmem:[%s1079_s29 + $0x44] sm:$0xf] %vm688_vm1, %v873_v57  ;;  %v532_v4 = vmax.f32 %v418_v60, 0.0  ;;  %v548_v5 = vmax.f32 %v482_v61, 0.0  ;;  %v420_v6 = vpop.f32.mrf.mxu0  ;;  %v484_v7 = vpop.f32.mrf.mxu1 }
  0xe7   : > { %695 = vst.msk [vmem:[%s1079_s29 + $0x18] sm:$0xf] %vm688_vm1, %v862_v0  ;;  %711 = vst.msk [vmem:[%s1079_s29 + $0x58] sm:$0xf] %vm688_vm1, %v878_v1  ;;  %v535_v8 = vmax.f32 %v429_v2, 0.0  ;;  %v551_v9 = vmax.f32 %v493_v3, 0.0  ;;  %v421_v10 = vadd.f32 %v1068_v19, %v420_v6  ;;  %v485_v11 = vadd.f32 %v1068_v19, %v484_v7 }
  0xe8   : > { %v860_v12 = vpack.c.bf16 %v532_v4, %v532_v4  ;;  %v876_v13 = vpack.c.bf16 %v548_v5, %v548_v5  ;;  %v923_v14 = vpop.f32.mrf.mxu0  ;;  %v939_v15 = vpop.f32.mrf.mxu1 }
  0xe9   : > { %v863_v16 = vpack.c.bf16 %v535_v8, %v535_v8  ;;  %v879_v17 = vpack.c.bf16 %v551_v9, %v551_v9  ;;  %v533_v18 = vmax.f32 %v421_v10, 0.0  ;;  %v549_v20 = vmax.f32 %v485_v11, 0.0 }
  0xea   : > { %693 = vst.msk [vmem:[%s1079_s29 + $0x10] sm:$0xf] %vm688_vm1, %v860_v12  ;;  %709 = vst.msk [vmem:[%s1079_s29 + $0x50] sm:$0xf] %vm688_vm1, %v876_v13  ;;  %v442_v21 = vadd.f32 %v923_v14, %v1068_v19  ;;  %v506_v22 = vadd.f32 %v939_v15, %v1068_v19  ;;  %v433_v23 = vpop.f32.mrf.mxu0  ;;  %v497_v24 = vpop.f32.mrf.mxu1 }
  0xeb   : > { %696 = vst.msk [vmem:[%s1079_s29 + $0x1c] sm:$0xf] %vm688_vm1, %v863_v16  ;;  %712 = vst.msk [vmem:[%s1079_s29 + $0x5c] sm:$0xf] %vm688_vm1, %v879_v17  ;;  %v861_v25 = vpack.c.bf16 %v533_v18, %v533_v18  ;;  %v877_v26 = vpack.c.bf16 %v549_v20, %v549_v20  ;;  %v434_v27 = vadd.f32 %v1068_v19, %v433_v23 }
  0xec   : > { %v498_v28 = vadd.f32 %v1068_v19, %v497_v24  ;;  %v538_v29 = vmax.f32 %v442_v21, 0.0  ;;  %v554_v30 = vmax.f32 %v506_v22, 0.0  ;;  %v924_v31 = vpop.f32.mrf.mxu0  ;;  %v940_v32 = vpop.f32.mrf.mxu1 }
  0xed   : > { %694 = vst.msk [vmem:[%s1079_s29 + $0x14] sm:$0xf] %vm688_vm1, %v861_v25  ;;  %710 = vst.msk [vmem:[%s1079_s29 + $0x54] sm:$0xf] %vm688_vm1, %v877_v26  ;;  %v536_v33 = vmax.f32 %v434_v27, 0.0  ;;  %v445_v35 = vadd.f32 %v924_v31, %v1068_v19  ;;  %v509_v36 = vadd.f32 %v940_v32, %v1068_v19 }
  0xee   : > { %v552_v34 = vmax.f32 %v498_v28, 0.0  ;;  %v866_v37 = vpack.c.bf16 %v538_v29, %v538_v29  ;;  %v882_v38 = vpack.c.bf16 %v554_v30, %v554_v30  ;;  %v436_v39 = vpop.f32.mrf.mxu0  ;;  %v500_v40 = vpop.f32.mrf.mxu1 }
  0xef   : > { %v864_v41 = vpack.c.bf16 %v536_v33, %v536_v33  ;;  %v539_v43 = vmax.f32 %v445_v35, 0.0  ;;  %v555_v44 = vmax.f32 %v509_v36, 0.0  ;;  %v437_v45 = vadd.f32 %v1068_v19, %v436_v39 }
  0xf0   : > { %v880_v42 = vpack.c.bf16 %v552_v34, %v552_v34  ;;  %699 = vst.msk [vmem:[%s1079_s29 + $0x28] sm:$0xf] %vm688_vm1, %v866_v37  ;;  %715 = vst.msk [vmem:[%s1079_s29 + $0x68] sm:$0xf] %vm688_vm1, %v882_v38  ;;  %v501_v46 = vadd.f32 %v1068_v19, %v500_v40  ;;  %v927_v47 = vpop.f32.mrf.mxu0  ;;  %v943_v48 = vpop.f32.mrf.mxu1 }
  0xf1   : > { %697 = vst.msk [vmem:[%s1079_s29 + $0x20] sm:$0xf] %vm688_vm1, %v864_v41  ;;  %v867_v49 = vpack.c.bf16 %v539_v43, %v539_v43  ;;  %v883_v50 = vpack.c.bf16 %v555_v44, %v555_v44  ;;  %v458_v51 = vadd.f32 %v927_v47, %v1068_v19  ;;  %v522_v52 = vadd.f32 %v943_v48, %v1068_v19 }
  0xf2   : > { %713 = vst.msk [vmem:[%s1079_s29 + $0x60] sm:$0xf] %vm688_vm1, %v880_v42  ;;  %v537_v53 = vmax.f32 %v437_v45, 0.0  ;;  %v553_v54 = vmax.f32 %v501_v46, 0.0  ;;  %v449_v55 = vpop.f32.mrf.mxu0  ;;  %v513_v56 = vpop.f32.mrf.mxu1 }
  0xf3   : > { %700 = vst.msk [vmem:[%s1079_s29 + $0x2c] sm:$0xf] %vm688_vm1, %v867_v49  ;;  %716 = vst.msk [vmem:[%s1079_s29 + $0x6c] sm:$0xf] %vm688_vm1, %v883_v50  ;;  %v542_v57 = vmax.f32 %v458_v51, 0.0  ;;  %v558_v58 = vmax.f32 %v522_v52, 0.0  ;;  %v450_v59 = vadd.f32 %v1068_v19, %v449_v55  ;;  %v514_v60 = vadd.f32 %v1068_v19, %v513_v56 }
  0xf4   : > { %v865_v61 = vpack.c.bf16 %v537_v53, %v537_v53  ;;  %v881_v62 = vpack.c.bf16 %v553_v54, %v553_v54  ;;  %v928_v63 = vpop.f32.mrf.mxu0  ;;  %v944_v0 = vpop.f32.mrf.mxu1 }
  0xf5   : > { %v870_v1 = vpack.c.bf16 %v542_v57, %v542_v57  ;;  %v886_v2 = vpack.c.bf16 %v558_v58, %v558_v58  ;;  %v540_v3 = vmax.f32 %v450_v59, 0.0  ;;  %v556_v4 = vmax.f32 %v514_v60, 0.0 }
  0xf6   : > { %698 = vst.msk [vmem:[%s1079_s29 + $0x24] sm:$0xf] %vm688_vm1, %v865_v61  ;;  %714 = vst.msk [vmem:[%s1079_s29 + $0x64] sm:$0xf] %vm688_vm1, %v881_v62  ;;  %v461_v5 = vadd.f32 %v928_v63, %v1068_v19  ;;  %v525_v6 = vadd.f32 %v944_v0, %v1068_v19  ;;  %v452_v7 = vpop.f32.mrf.mxu0  ;;  %v516_v8 = vpop.f32.mrf.mxu1 }
  0xf7   : > { %703 = vst.msk [vmem:[%s1079_s29 + $0x38] sm:$0xf] %vm688_vm1, %v870_v1  ;;  %719 = vst.msk [vmem:[%s1079_s29 + $0x78] sm:$0xf] %vm688_vm1, %v886_v2  ;;  %v868_v9 = vpack.c.bf16 %v540_v3, %v540_v3  ;;  %v884_v10 = vpack.c.bf16 %v556_v4, %v556_v4  ;;  %v453_v11 = vadd.f32 %v1068_v19, %v452_v7 }
  0xf8   : > { %v517_v12 = vadd.f32 %v1068_v19, %v516_v8  ;;  %v543_v13 = vmax.f32 %v461_v5, 0.0  ;;  %v559_v14 = vmax.f32 %v525_v6, 0.0 }
  0xf9   : > { %701 = vst.msk [vmem:[%s1079_s29 + $0x30] sm:$0xf] %vm688_vm1, %v868_v9  ;;  %717 = vst.msk [vmem:[%s1079_s29 + $0x70] sm:$0xf] %vm688_vm1, %v884_v10  ;;  %v541_v15 = vmax.f32 %v453_v11, 0.0 }
  0xfa   : > { %v557_v16 = vmax.f32 %v517_v12, 0.0  ;;  %v871_v17 = vpack.c.bf16 %v543_v13, %v543_v13  ;;  %v887_v18 = vpack.c.bf16 %v559_v14, %v559_v14 }
  0xfb   : > { %v869_v20 = vpack.c.bf16 %v541_v15, %v541_v15 }
  0xfc   : > { %v885_v21 = vpack.c.bf16 %v557_v16, %v557_v16  ;;  %704 = vst.msk [vmem:[%s1079_s29 + $0x3c] sm:$0xf] %vm688_vm1, %v871_v17  ;;  %720 = vst.msk [vmem:[%s1079_s29 + $0x7c] sm:$0xf] %vm688_vm1, %v887_v18 }
  0xfd   : > { %702 = vst.msk [vmem:[%s1079_s29 + $0x34] sm:$0xf] %vm688_vm1, %v869_v20 }
  0xfe   : > { %718 = vst.msk [vmem:[%s1079_s29 + $0x74] sm:$0xf] %vm688_vm1, %v885_v21 }
  0xff PF: > { %s13_s12 = sadd.s32 1, %s984_s12  }
 0x100   : > { %p10_p4 = scmp.ge.s32.totalorder %s13_s12, 6  }
 0x102   :  { %12 = sbr.rel (!%p10_p4) target bundleno = 1 (0x1), region = 62 }

</bundles_post_ra>
